<compile_context>
chip_gen: v5e
topology: v5e:2x2
jax: 0.10.0
libtpu: 0.0.40
codegen_flags: <defaults>
</compile_context>

<pallas_src>
import functools

import jax
import jax.numpy as jnp
from jax.experimental import pallas as pl
from jax.experimental.pallas import tpu as pltpu


def _layer_norm_kernel(x_ref, gamma_ref, beta_ref, o_ref, *, eps,
                       low_precision_elementwise):
    # x_ref: [row_tile, d]   gamma_ref/beta_ref: [1, d]   o_ref: [row_tile, d]
    x = x_ref[...]
    xf = x.astype(jnp.float32)
    d = xf.shape[-1]
    inv_d = 1.0 / d

    # Row statistics in f32, centered (two-pass) variance.
    mean = jnp.sum(xf, axis=-1, keepdims=True) * inv_d
    xc = xf - mean
    var = jnp.sum(xc * xc, axis=-1, keepdims=True) * inv_d
    inv_std = jax.lax.rsqrt(var + eps)

    if low_precision_elementwise:
        # bf16/f16 elementwise pass on chips with low-precision VALUs
        # (v6e/v7x): only the per-row scalars are cast down; the (row_tile, d)
        # tensors stay in the input dtype, halving vreg and vld/vst pressure.
        dt = x.dtype
        out = (((x - mean.astype(dt)) * inv_std.astype(dt))
               * gamma_ref[...].astype(dt) + beta_ref[...].astype(dt))
    else:
        # inv_std and gamma applied as separate broadcast multiplies (same
        # VALU count as pre-multiplying them, no extra (row_tile, d) temporary).
        out = ((xc * inv_std) * gamma_ref[...].astype(jnp.float32)
               + beta_ref[...].astype(jnp.float32))
    o_ref[...] = out.astype(o_ref.dtype)


def _vmem_capacity_bytes():
    try:
        cap = getattr(pltpu.get_tpu_info(), "vmem_capacity_bytes", None)
        if cap:
            return int(cap)
    except Exception:
        pass
    try:
        if "v7" in jax.devices()[0].device_kind.lower():
            return 64 * 1024 * 1024
    except Exception:
        pass
    return 128 * 1024 * 1024


def _is_low_precision_vpu_chip():
    # bf16 VALUs exist from v6 on; v5e and older widen to f32 anyway.
    try:
        kind = jax.devices()[0].device_kind.lower()
    except Exception:
        return False
    return not any(tag in kind for tag in ("v2", "v3", "v4", "v5"))


def layer_norm(x, gamma, beta, *, eps=1e-5, row_tile=None):
    """LayerNorm over the last axis. x: [batch, seq, d_model]; gamma, beta: [d_model]."""
    b, s, d = x.shape
    rows = b * s
    x2 = x.reshape(rows, d)
    gamma2 = gamma.reshape(1, d)
    beta2 = beta.reshape(1, d)

    itemsize = jnp.dtype(x.dtype).itemsize
    # Sublane packing: f32 vregs are [8, 128]; bf16/f16 pack as [16, 128].
    sublane = 16 if itemsize == 2 else 8

    vmem_cap = _vmem_capacity_bytes()
    row_bytes = d * itemsize

    # Per-grid-step VMEM estimate: 4 pipeline buffers (double-buffered in + out)
    # in the input dtype plus ~4 full-tile f32 intermediates.
    def step_vmem(rt):
        return 4 * rt * row_bytes + 4 * rt * d * 4

    if row_tile is None:
        # ~8 MiB of x per step on 128-MiB-VMEM chips (v5e/v6e), ~4 MiB on v7x.
        target_tile_bytes = (8 if vmem_cap >= 96 * 1024 * 1024 else 4) * 1024 * 1024
        row_tile = max(sublane, (target_tile_bytes // row_bytes) // sublane * sublane)

        # Clamp so pipeline buffers + f32 intermediates stay under ~half of
        # physical VMEM (matters for very wide d, and on v7x's 64 MiB).
        budget = vmem_cap // 2
        while row_tile > sublane and step_vmem(row_tile) > budget:
            row_tile = max(sublane, (row_tile // 2) // sublane * sublane)
        # TODO(synk): if d is so wide that even one sublane group of rows blows
        # the budget, the normalize would need chunking along d in-kernel.

        if rows <= row_tile:
            # One full-extent block (no sublane divisibility requirement when
            # the block equals the whole axis), single grid step.
            row_tile = rows
        else:
            # Keep >= 4 grid steps so the 'parallel' axis can be sharded across
            # both v7x TensorCores and the pipeline stays busy.
            min_steps = 4
            if rows >= min_steps * sublane:
                row_tile = min(row_tile,
                               max(sublane, (rows // min_steps) // sublane * sublane))

    grid = (pl.cdiv(rows, row_tile),)

    # Scoped-VMEM limit: enough for the chosen tile plus slack, but leave
    # >=16 MiB of physical headroom (matters on v7x's 64 MiB per-TC VMEM).
    vmem_limit = min(vmem_cap - 16 * 1024 * 1024,
                     max(32 * 1024 * 1024, step_vmem(row_tile) + 2 * 1024 * 1024))

    low_precision_elementwise = (itemsize == 2) and _is_low_precision_vpu_chip()

    kernel = functools.partial(
        _layer_norm_kernel, eps=eps,
        low_precision_elementwise=low_precision_elementwise)

    out = pl.pallas_call(
        kernel,
        out_shape=jax.ShapeDtypeStruct((rows, d), x.dtype),
        grid_spec=pltpu.PrefetchScalarGridSpec(
            num_scalar_prefetch=0,
            grid=grid,
            in_specs=[
                pl.BlockSpec((row_tile, d), lambda i: (i, 0)),
                # gamma/beta blocks are constant across the grid (index map
                # always (0, 0)), so the pipeline keeps them resident in VMEM.
                pl.BlockSpec((1, d), lambda i: (0, 0)),
                pl.BlockSpec((1, d), lambda i: (0, 0)),
            ],
            out_specs=pl.BlockSpec((row_tile, d), lambda i: (i, 0)),
        ),
        compiler_params=pltpu.CompilerParams(
            # Rows are independent -> shard the grid across TCs on v7x.
            dimension_semantics=("parallel",),
            vmem_limit_bytes=int(vmem_limit),
        ),
        cost_estimate=pl.CostEstimate(
            flops=8 * rows * d,
            transcendentals=rows,
            bytes_accessed=2 * rows * d * itemsize
            + 2 * d * jnp.dtype(gamma.dtype).itemsize,
        ),
    )(x2, gamma2, beta2)

    return out.reshape(b, s, d)


def _reference(x, gamma, beta, eps):
    mean = jnp.mean(x, axis=-1, keepdims=True)
    var = jnp.mean((x - mean) ** 2, axis=-1, keepdims=True)
    return gamma * ((x - mean) / jnp.sqrt(var + eps)) + beta


if __name__ == "__main__":
    key = jax.random.PRNGKey(0)
    # Small demo shapes; d_model=128 keeps the lane axis dense (full vreg,
    # unmasked stores).
    batch, seq, d_model = 2, 8, 128
    k1, k2, k3 = jax.random.split(key, 3)

    x = jax.random.normal(k1, (batch, seq, d_model), dtype=jnp.float32)
    # Deterministic parameter init matching nn.Parameter(torch.ones/zeros).
    gamma = jnp.ones((d_model,), dtype=jnp.float32)
    beta = jnp.zeros((d_model,), dtype=jnp.float32)

    out = jax.block_until_ready(layer_norm(x, gamma, beta, eps=1e-5))
    ref = _reference(x, gamma, beta, 1e-5)
    assert jnp.allclose(out, ref, atol=3e-5, rtol=1e-5), "mismatch vs reference"

    # rows not a multiple of the sublane count -> single full-extent block.
    x_odd = jax.random.normal(k2, (3, 5, d_model), dtype=jnp.float32)
    out_odd = jax.block_until_ready(layer_norm(x_odd, gamma, beta, eps=1e-5))
    ref_odd = _reference(x_odd, gamma, beta, 1e-5)
    assert jnp.allclose(out_odd, ref_odd, atol=3e-5, rtol=1e-5), "mismatch (full block)"

    # rows (40) not a multiple of the row tile (16) -> exercises the masked
    # partial final block that replaced the old jnp.pad + output slice path.
    x_tail = jax.random.normal(k3, (5, 8, d_model), dtype=jnp.float32)
    out_tail = jax.block_until_ready(
        layer_norm(x_tail, gamma, beta, eps=1e-5, row_tile=16))
    ref_tail = _reference(x_tail, gamma, beta, 1e-5)
    assert jnp.allclose(out_tail, ref_tail, atol=3e-5, rtol=1e-5), "mismatch (partial tail)"

    print("KERNEL_OK")
</pallas_src>

<mosaic_0001>
module attributes {stable_mosaic.version = 11 : i64} {
  func.func @_layer_norm_kernel(%arg0: i32, %arg1: memref<16x128xf32, #tpu.memory_space<vmem>>, %arg2: memref<1x128xf32, #tpu.memory_space<vmem>>, %arg3: memref<1x128xf32, #tpu.memory_space<vmem>>, %arg4: memref<16x128xf32, #tpu.memory_space<vmem>>) attributes {dimension_semantics = [#tpu.dimension_semantics<parallel>], iteration_bounds = array<i64: 1>, scalar_prefetch = 0 : i64, scratch_operands = 0 : i64, tpu.core_type = #tpu.core_type<tc>, window_params = [{transform_indices = @transform_0, window_bounds = array<i64: 16, 128>}, {pipeline_mode = #tpu.pipeline_mode<synchronous>, transform_indices = @transform_1, window_bounds = array<i64: 1, 128>}, {pipeline_mode = #tpu.pipeline_mode<synchronous>, transform_indices = @transform_2, window_bounds = array<i64: 1, 128>}, {transform_indices = @transform_3, window_bounds = array<i64: 16, 128>}]} {
    %c0 = arith.constant 0 : index
    %c0_0 = arith.constant 0 : index
    %0 = vector.load %arg1[%c0, %c0_0] : memref<16x128xf32, #tpu.memory_space<vmem>>, vector<16x128xf32>
    %cst = arith.constant dense<0.000000e+00> : vector<16xf32>
    %1 = vector.multi_reduction <add>, %0, %cst [1] : vector<16x128xf32> to vector<16xf32>
    %2 = vector.shape_cast %1 : vector<16xf32> to vector<16x1xf32>
    %cst_1 = arith.constant 7.812500e-03 : f32
    %3 = vector.broadcast %cst_1 : f32 to vector<16x1xf32>
    %4 = arith.mulf %2, %3 : vector<16x1xf32>
    %5 = vector.broadcast %4 : vector<16x1xf32> to vector<16x128xf32>
    %6 = arith.subf %0, %5 : vector<16x128xf32>
    %7 = arith.mulf %6, %6 : vector<16x128xf32>
    %cst_2 = arith.constant dense<0.000000e+00> : vector<16xf32>
    %8 = vector.multi_reduction <add>, %7, %cst_2 [1] : vector<16x128xf32> to vector<16xf32>
    %9 = vector.shape_cast %8 : vector<16xf32> to vector<16x1xf32>
    %cst_3 = arith.constant 7.812500e-03 : f32
    %10 = vector.broadcast %cst_3 : f32 to vector<16x1xf32>
    %11 = arith.mulf %9, %10 : vector<16x1xf32>
    %cst_4 = arith.constant 9.99999974E-6 : f32
    %12 = vector.broadcast %cst_4 : f32 to vector<16x1xf32>
    %13 = arith.addf %11, %12 : vector<16x1xf32>
    %14 = math.rsqrt %13 : vector<16x1xf32>
    %15 = vector.broadcast %14 : vector<16x1xf32> to vector<16x128xf32>
    %16 = arith.mulf %6, %15 : vector<16x128xf32>
    %c0_5 = arith.constant 0 : index
    %c0_6 = arith.constant 0 : index
    %17 = vector.load %arg2[%c0_5, %c0_6] : memref<1x128xf32, #tpu.memory_space<vmem>>, vector<1x128xf32>
    %18 = vector.broadcast %17 : vector<1x128xf32> to vector<16x128xf32>
    %19 = arith.mulf %16, %18 : vector<16x128xf32>
    %c0_7 = arith.constant 0 : index
    %c0_8 = arith.constant 0 : index
    %20 = vector.load %arg3[%c0_7, %c0_8] : memref<1x128xf32, #tpu.memory_space<vmem>>, vector<1x128xf32>
    %21 = vector.broadcast %20 : vector<1x128xf32> to vector<16x128xf32>
    %22 = arith.addf %19, %21 : vector<16x128xf32>
    %c0_9 = arith.constant 0 : index
    %c0_10 = arith.constant 0 : index
    %23 = vector.load %arg4[%c0_9, %c0_10] : memref<16x128xf32, #tpu.memory_space<vmem>>, vector<16x128xf32>
    tpu.vector_store %arg4[%c0_9, %c0_10], %22 {strides = array<i32>} : memref<16x128xf32, #tpu.memory_space<vmem>>, vector<16x128xf32>,
    return
  }
  func.func @transform_0(%arg0: i32) -> (i32, i32) {
    %c0_i32 = arith.constant 0 : i32
    %c0_i32_0 = arith.constant 0 : i32
    return %arg0, %c0_i32 : i32, i32
  }
  func.func @transform_1(%arg0: i32) -> (i32, i32) {
    %c0_i32 = arith.constant 0 : i32
    %c0_i32_0 = arith.constant 0 : i32
    %c0_i32_1 = arith.constant 0 : i32
    return %c0_i32, %c0_i32_0 : i32, i32
  }
  func.func @transform_2(%arg0: i32) -> (i32, i32) {
    %c0_i32 = arith.constant 0 : i32
    %c0_i32_0 = arith.constant 0 : i32
    %c0_i32_1 = arith.constant 0 : i32
    return %c0_i32, %c0_i32_0 : i32, i32
  }
  func.func @transform_3(%arg0: i32) -> (i32, i32) {
    %c0_i32 = arith.constant 0 : i32
    %c0_i32_0 = arith.constant 0 : i32
    return %arg0, %c0_i32 : i32, i32
  }
}

</mosaic_0001>

<bundles_post_ra>
// kernel: tpu_custom_call.1
= control target key start
LH: loop header
LB: loop body
LE: loop exit
PB: predicated region body
PF: predicated region fallthrough
CT: control target
= control target key end

     0   :  { %8 = vsyncpa [#allocation3], 0  ;;  %s253_s0 = inlined_call_operand.hbm [shape: f32[16,128], index: 0, kind: input, shape index: {}]   ;;  %s254_s1 = inlined_call_operand.hbm [shape: f32[1,128], index: 1, kind: input, shape index: {}]   ;;  %s255_s2 = inlined_call_operand.vmem [shape: f32[1,128], index: 2, kind: input, shape index: {}]   ;;  %s256_s3 = inlined_call_operand.hbm [shape: f32[16,128], index: 3, kind: output, shape index: {}]  }
   0x1   :  { %9 = vsyncpa [#allocation6], 0 }
   0x2   :  { %10 = vsyncpa [#allocation4], 0  ;;  %s15_s14 = sshll.u32 %s253_s0, 4  ;;  %s210_s15 = smov [#allocation2]   ;;  %s16_s14 = int_to_ptr.hbm [resolvable:$true] %s15_s14 }
   0x3   :  { %s17_s16 = sshll.u32 %s210_s15, 4  ;;  %s29_s19 = sshll.u32 %s254_s1, 4  ;;  %s18_s16 = int_to_ptr.vmem [resolvable:$true] %s17_s16  ;;  %s30_s19 = int_to_ptr.hbm [resolvable:$true] %s29_s19 }
   0x4   :  { %s211_s20 = smov 128   ;;  %s212_s21 = smov 8  }
   0x5   :  { %23 = dma.hbm_to_vmem [thread:$0]  %s16_s14, 256, %s18_s16, [#allocation3], %s211_s20, %s211_s20, %s212_s21  }
   0x6   :  { %s213_s22 = smov [#allocation5]  }
   0x7   :  { %s31_s23 = sshll.u32 %s213_s22, 4  ;;  %s32_s23 = int_to_ptr.vmem [resolvable:$true] %s31_s23 }
   0x8   :  { %34 = dma.hbm_to_vmem [thread:$0]  %s30_s19, 16, %s32_s23, [#allocation6]  }
   0x9   :  { %204 = dma.done.wait [#allocation3], 256  }
   0xa   :  { %205 = vsyncadd [#allocation3], 4294967040 }
   0xb   :  { %206 = dma.done.wait [#allocation6], 16  }
   0xc   :  { %207 = vsyncadd [#allocation6], 4294967280  ;;  %v45_v0 = vld [vmem:[#allocation2] sm:$0xff]  ;;  %v46_v1 = vld [vmem:[#allocation2 + $0x8] sm:$0xff]  ;;  %s214_s24 = smov [#allocation7]   ;;  %s107_s28 = sshll.u32 %s256_s3, 4  ;;  %s108_s28 = int_to_ptr.hbm [resolvable:$true] %s107_s28 }
   0xd   :  { %47 = vadd.xlane.f32.xlu0 %v45_v0  ;;  %v126_v24 = vld [vmem:[#allocation5] ss:$0 sm:$0xff]  ;;  %v127_v28 = vld [vmem:[%s255_s2] ss:$0 sm:$0xff]  ;;  %s105_s25 = sshll.u32 %s214_s24, 4  ;;  %s106_s25 = int_to_ptr.vmem [resolvable:$true] %s105_s25 }
  0x15   :  { %49 = vadd.xlane.f32.xlu0 %v46_v1 }
  0x80   :  { %v48_v2 = vpop.xlane.xlu0 %47 }
  0x81   :  { %v51_v3 = vmul.f32 0.0078125, %v48_v2 }
  0x83   :  { %v53_v4 = vsub.f32 %v45_v0, %v51_v3 }
  0x85   :  { %v55_v5 = vmul.f32 %v53_v4, %v53_v4 }
  0x87   :  { %57 = vadd.xlane.f32.xlu1 %v55_v5 }
  0x88   :  { %v50_v6 = vpop.xlane.xlu0 %49 }
  0x89   :  { %v52_v7 = vmul.f32 0.0078125, %v50_v6 }
  0x8b   :  { %v54_v8 = vsub.f32 %v46_v1, %v52_v7 }
  0x8d   :  { %v56_v9 = vmul.f32 %v54_v8, %v54_v8 }
  0x8f   :  { %59 = vadd.xlane.f32.xlu1 %v56_v9 }
  0xfa   :  { %v58_v10 = vpop.xlane.xlu1 %57 }
  0xfb   :  { %v61_v11 = vmul.f32 0.0078125, %v58_v10 }
  0xfd   :  { %v63_v12 = vadd.f32 1e-05, %v61_v11 }
  0xff   :  { %128 = vrsqrt.f32 %v63_v12  ;;  %vm71_vm1 = vweird.f32 %v63_v12 }
 0x102   :  { %v60_v13 = vpop.xlane.xlu1 %59 }
 0x103   :  { %v62_v14 = vmul.f32 0.0078125, %v60_v13 }
 0x105   :  { %v129_v15 = vpop.eup %128  ;;  %v64_v16 = vadd.f32 1e-05, %v62_v14 }
 0x106   :  { %v66_v17 = vmul.f32 %v129_v15, %v63_v12  ;;  %vm72_vm0 = vweird.f32 %v129_v15 }
 0x107   :  { %130 = vrsqrt.f32 %v64_v16  ;;  %vm73_vm2 = vmor %vm71_vm1, %vm72_vm0  ;;  %vm81_vm4 = vweird.f32 %v64_v16 }
 0x108   :  { %v67_v18 = vmul.f32 %v129_v15, %v66_v17 }
 0x10a   :  { %v68_v19 = vmul.f32 0.5, %v67_v18 }
 0x10c   :  { %v69_v20 = vsub.f32 1.5, %v68_v19 }
 0x10d   :  { %v131_v21 = vpop.eup %130 }
 0x10e   :  { %v70_v22 = vmul.f32 %v129_v15, %v69_v20  ;;  %v76_v23 = vmul.f32 %v131_v21, %v64_v16  ;;  %vm82_vm3 = vweird.f32 %v131_v21 }
 0x10f   :  { %vm83_vm5 = vmor %vm81_vm4, %vm82_vm3 }
 0x110   :  { %v74_v25 = vsel %vm73_vm2, %v129_v15, %v70_v22  ;;  %v77_v26 = vmul.f32 %v131_v21, %v76_v23 }
 0x111   :  { %v85_v27 = vmul.f32 %v74_v25, %v53_v4 }
 0x112   :  { %v78_v29 = vmul.f32 0.5, %v77_v26 }
 0x113   :  { %v91_v30 = vmul.f32 %v126_v24, %v85_v27 }
 0x114   :  { %v79_v31 = vsub.f32 1.5, %v78_v29 }
 0x115   :  { %v97_v32 = vadd.f32 %v127_v28, %v91_v30 }
 0x116   :  { %v80_v33 = vmul.f32 %v131_v21, %v79_v31 }
 0x117   :  { %99 = vst [vmem:[#allocation7] sm:$0xff] %v97_v32 }
 0x118   :  { %v84_v34 = vsel %vm83_vm5, %v131_v21, %v80_v33 }
 0x119   :  { %v86_v35 = vmul.f32 %v84_v34, %v54_v8 }
 0x11b   :  { %v92_v36 = vmul.f32 %v126_v24, %v86_v35 }
 0x11d   :  { %v98_v37 = vadd.f32 %v127_v28, %v92_v36 }
 0x11f   :  { %100 = vst [vmem:[#allocation7 + $0x8] sm:$0xff] %v98_v37 }
 0x120   :  { %113 = dma.vmem_to_hbm [thread:$0]  %s106_s25, 256, %s108_s28, [#allocation4], %s211_s20, %s211_s20, %s212_s21  }
 0x121   :  { %208 = dma.done.wait [#allocation4], 256  }
 0x122   :  { %209 = vsyncadd [#allocation4], 4294967040 }
 0x123   :  { %118 = vsyncpa [#allocation3], 1 }
 0x124   :  { %119 = vsyncpa [#allocation6], 1 }
 0x125   :  { %120 = vsyncpa [#allocation4], 1 }

</bundles_post_ra>
